<compile_context>
chip_gen: v6e
topology: v6e:2x2x1
jax: 0.10.0
libtpu: 0.0.40
codegen_flags: <defaults>
</compile_context>

<pallas_src>
import jax
import jax.numpy as jnp
from jax.experimental import pallas as pl
from jax.experimental.pallas import tpu as pltpu


def _gate_residual_kernel(x1_ref, x2_ref, w1_ref, w2_ref, b_ref, o_ref):
    x1 = x1_ref[...]
    x2 = x2_ref[...]
    # gate pre-activation: cat(x1, x2) @ W.T + b  ==  x1 @ W1 + x2 @ W2 + b
    # Operands stay in native dtype (full-rate MXU for bf16); accumulate in f32.
    z = (jnp.dot(x1, w1_ref[...], preferred_element_type=jnp.float32)
         + jnp.dot(x2, w2_ref[...], preferred_element_type=jnp.float32)
         + b_ref[...].astype(jnp.float32))
    gate = jax.nn.sigmoid(z).astype(x1.dtype)
    # x1*g + x2*(1-g)  ==  x2 + g*(x1 - x2)   (one fewer multiply)
    o_ref[...] = (x2 + gate * (x1 - x2)).astype(o_ref.dtype)


def _round_up(x, m):
    return (x + m - 1) // m * m


def _choose_tile_m(rows, D, x_dsize, w_dsize, budget_bytes, tile_m_max):
    """Largest row tile (multiple of 8, <= tile_m_max) whose working set fits budget."""
    # Worst case: W1/W2 double-buffered (fallback path) + bias, plus
    # double-buffered x1/x2/out tiles.
    fixed = 2 * 2 * D * D * w_dsize + 2 * D * 4
    tile_m = min(_round_up(tile_m_max, 8), _round_up(rows, 8))
    while tile_m > 8:
        io = 3 * 2 * tile_m * D * x_dsize
        if fixed + io <= budget_bytes:
            break
        tile_m = max(8, (tile_m // 2) // 8 * 8)
    return tile_m


def prepare_gate_residual_params(weight, bias):
    """weight: [D, 2D] (PyTorch Linear layout), bias: [D].

    Call ONCE at parameter-load time (hoisted out of the per-call path) and pass the
    results to gate_residual().
    """
    D = weight.shape[0]
    w1 = jnp.transpose(weight[:, :D])   # [D, D]
    w2 = jnp.transpose(weight[:, D:])   # [D, D]
    return w1, w2, bias.reshape(1, D)


def gate_residual(x1, x2, w1, w2, bias2d, *, tile_m=512,
                  single_buffer_weights=True,
                  vmem_budget_bytes=40 * 1024 * 1024):
    """x1, x2: [B, S, D].  w1, w2: [D, D].  bias2d: [1, D]."""
    B, S, D = x1.shape
    rows = B * S
    x_dsize = jnp.dtype(x1.dtype).itemsize
    w_dsize = jnp.dtype(w1.dtype).itemsize

    tile_m = _choose_tile_m(rows, D, x_dsize, w_dsize, vmem_budget_bytes, tile_m)
    padded_rows = _round_up(rows, tile_m)

    x1f = x1.reshape(rows, D)
    x2f = x2.reshape(rows, D)
    if padded_rows != rows:
        pad = ((0, padded_rows - rows), (0, 0))
        x1f = jnp.pad(x1f, pad)
        x2f = jnp.pad(x2f, pad)

    grid = (padded_rows // tile_m,)

    # Grid-invariant operands: a second pipeline buffer is pure VMEM waste.
    const_kwargs = dict(pipeline_mode=pl.Buffered(1)) if single_buffer_weights else {}

    in_specs = [
        pl.BlockSpec((tile_m, D), lambda i: (i, 0)),                 # x1 row tile
        pl.BlockSpec((tile_m, D), lambda i: (i, 0)),                 # x2 row tile
        pl.BlockSpec((D, D), lambda i: (0, 0), **const_kwargs),      # W1 (resident)
        pl.BlockSpec((D, D), lambda i: (0, 0), **const_kwargs),      # W2 (resident)
        pl.BlockSpec((1, D), lambda i: (0, 0), **const_kwargs),      # bias (resident)
    ]

    cost = pl.CostEstimate(
        flops=4 * padded_rows * D * D + 4 * padded_rows * D,
        transcendentals=padded_rows * D,
        bytes_accessed=3 * rows * D * x_dsize + 2 * D * D * w_dsize + D * 4,
    )

    out = pl.pallas_call(
        _gate_residual_kernel,
        out_shape=jax.ShapeDtypeStruct((padded_rows, D), x1.dtype),
        grid_spec=pltpu.PrefetchScalarGridSpec(
            num_scalar_prefetch=0,
            grid=grid,
            in_specs=in_specs,
            out_specs=pl.BlockSpec((tile_m, D), lambda i: (i, 0)),
        ),
        compiler_params=pltpu.CompilerParams(
            dimension_semantics=("parallel",),      # megacore-shardable row axis
            vmem_limit_bytes=48 * 1024 * 1024,      # fits v7x's 64 MiB VMEM too
        ),
        cost_estimate=cost,
    )(x1f, x2f, w1, w2, bias2d)

    if padded_rows != rows:
        out = out[:rows]
    return out.reshape(B, S, D)


def _reference(x1, x2, weight, bias):
    cat = jnp.concatenate([x1, x2], axis=-1)
    gate = jax.nn.sigmoid(jnp.einsum("bsk,dk->bsd", cat, weight) + bias)
    return x1 * gate + x2 * (1.0 - gate)


if __name__ == "__main__":
    B, S, D = 2, 8, 32  # batch, seq, isize
    key = jax.random.PRNGKey(0)
    k1, k2, kw, kb = jax.random.split(key, 4)

    x1 = jax.random.normal(k1, (B, S, D), dtype=jnp.float32)
    x2 = jax.random.normal(k2, (B, S, D), dtype=jnp.float32)
    # Deterministic "Linear(isize*2, isize)" params: weight [D, 2D], bias [D].
    weight = jax.random.normal(kw, (D, 2 * D), dtype=jnp.float32) * 0.1
    bias = jax.random.normal(kb, (D,), dtype=jnp.float32) * 0.1

    # Hoisted, one-time parameter preparation (split + transpose of the Linear weight).
    w1, w2, b2d = prepare_gate_residual_params(weight, bias)

    try:
        out = jax.block_until_ready(
            gate_residual(x1, x2, w1, w2, b2d, single_buffer_weights=True))
    except Exception:
        # Installed jax may not accept single-buffered (Buffered(1)) specs; fall back
        # to default double-buffered weights (correctness unaffected).
        out = jax.block_until_ready(
            gate_residual(x1, x2, w1, w2, b2d, single_buffer_weights=False))

    ref = _reference(x1, x2, weight, bias)
    assert out.shape == (B, S, D)
    assert jnp.allclose(out, ref, atol=1e-4, rtol=1e-4), "mismatch vs reference"

    print("KERNEL_OK")
</pallas_src>

<mosaic_0001>
module attributes {stable_mosaic.version = 11 : i64} {
  func.func @_gate_residual_kernel(%arg0: i32, %arg1: memref<16x32xf32, #tpu.memory_space<vmem>>, %arg2: memref<16x32xf32, #tpu.memory_space<vmem>>, %arg3: memref<32x32xf32, #tpu.memory_space<vmem>>, %arg4: memref<32x32xf32, #tpu.memory_space<vmem>>, %arg5: memref<1x32xf32, #tpu.memory_space<vmem>>, %arg6: memref<16x32xf32, #tpu.memory_space<vmem>>) attributes {dimension_semantics = [#tpu.dimension_semantics<parallel>], iteration_bounds = array<i64: 1>, scalar_prefetch = 0 : i64, scratch_operands = 0 : i64, tpu.core_type = #tpu.core_type<tc>, window_params = [{transform_indices = @transform_0, window_bounds = array<i64: 16, 32>}, {transform_indices = @transform_1, window_bounds = array<i64: 16, 32>}, {pipeline_mode = #tpu.pipeline_mode<synchronous>, transform_indices = @transform_2, window_bounds = array<i64: 32, 32>}, {pipeline_mode = #tpu.pipeline_mode<synchronous>, transform_indices = @transform_3, window_bounds = array<i64: 32, 32>}, {pipeline_mode = #tpu.pipeline_mode<synchronous>, transform_indices = @transform_4, window_bounds = array<i64: 1, 32>}, {transform_indices = @transform_5, window_bounds = array<i64: 16, 32>}]} {
    %c0 = arith.constant 0 : index
    %c0_0 = arith.constant 0 : index
    %0 = vector.load %arg1[%c0, %c0_0] : memref<16x32xf32, #tpu.memory_space<vmem>>, vector<16x32xf32>
    %c0_1 = arith.constant 0 : index
    %c0_2 = arith.constant 0 : index
    %1 = vector.load %arg2[%c0_1, %c0_2] : memref<16x32xf32, #tpu.memory_space<vmem>>, vector<16x32xf32>
    %c0_3 = arith.constant 0 : index
    %c0_4 = arith.constant 0 : index
    %2 = vector.load %arg3[%c0_3, %c0_4] : memref<32x32xf32, #tpu.memory_space<vmem>>, vector<32x32xf32>
    %cst = arith.constant dense<0.000000e+00> : vector<16x32xf32>
    %3 = tpu.matmul %0, %2, %cst {dimension_numbers = #tpu.dot_dimension_numbers<[1], [0], [0], [1], [0, 0, 1, 1], [], []>} : vector<16x32xf32>, vector<32x32xf32>, vector<16x32xf32> -> vector<16x32xf32>
    %c0_5 = arith.constant 0 : index
    %c0_6 = arith.constant 0 : index
    %4 = vector.load %arg4[%c0_5, %c0_6] : memref<32x32xf32, #tpu.memory_space<vmem>>, vector<32x32xf32>
    %cst_7 = arith.constant dense<0.000000e+00> : vector<16x32xf32>
    %5 = tpu.matmul %1, %4, %cst_7 {dimension_numbers = #tpu.dot_dimension_numbers<[1], [0], [0], [1], [0, 0, 1, 1], [], []>} : vector<16x32xf32>, vector<32x32xf32>, vector<16x32xf32> -> vector<16x32xf32>
    %6 = arith.addf %3, %5 : vector<16x32xf32>
    %c0_8 = arith.constant 0 : index
    %c0_9 = arith.constant 0 : index
    %7 = vector.load %arg5[%c0_8, %c0_9] : memref<1x32xf32, #tpu.memory_space<vmem>>, vector<1x32xf32>
    %8 = vector.broadcast %7 : vector<1x32xf32> to vector<16x32xf32>
    %9 = arith.addf %6, %8 : vector<16x32xf32>
    %10 = arith.negf %9 : vector<16x32xf32>
    %11 = math.exp %10 : vector<16x32xf32>
    %cst_10 = arith.constant 1.000000e+00 : f32
    %12 = vector.broadcast %cst_10 : f32 to vector<16x32xf32>
    %13 = arith.addf %12, %11 : vector<16x32xf32>
    %14 = arith.divf %12, %13 : vector<16x32xf32>
    %15 = arith.subf %0, %1 : vector<16x32xf32>
    %16 = arith.mulf %14, %15 : vector<16x32xf32>
    %17 = arith.addf %1, %16 : vector<16x32xf32>
    %c0_11 = arith.constant 0 : index
    %c0_12 = arith.constant 0 : index
    %18 = vector.load %arg6[%c0_11, %c0_12] : memref<16x32xf32, #tpu.memory_space<vmem>>, vector<16x32xf32>
    tpu.vector_store %arg6[%c0_11, %c0_12], %17 {strides = array<i32>} : memref<16x32xf32, #tpu.memory_space<vmem>>, vector<16x32xf32>,
    return
  }
  func.func @transform_0(%arg0: i32) -> (i32, i32) {
    %c0_i32 = arith.constant 0 : i32
    %c0_i32_0 = arith.constant 0 : i32
    return %arg0, %c0_i32 : i32, i32
  }
  func.func @transform_1(%arg0: i32) -> (i32, i32) {
    %c0_i32 = arith.constant 0 : i32
    %c0_i32_0 = arith.constant 0 : i32
    return %arg0, %c0_i32 : i32, i32
  }
  func.func @transform_2(%arg0: i32) -> (i32, i32) {
    %c0_i32 = arith.constant 0 : i32
    %c0_i32_0 = arith.constant 0 : i32
    %c0_i32_1 = arith.constant 0 : i32
    return %c0_i32, %c0_i32_0 : i32, i32
  }
  func.func @transform_3(%arg0: i32) -> (i32, i32) {
    %c0_i32 = arith.constant 0 : i32
    %c0_i32_0 = arith.constant 0 : i32
    %c0_i32_1 = arith.constant 0 : i32
    return %c0_i32, %c0_i32_0 : i32, i32
  }
  func.func @transform_4(%arg0: i32) -> (i32, i32) {
    %c0_i32 = arith.constant 0 : i32
    %c0_i32_0 = arith.constant 0 : i32
    %c0_i32_1 = arith.constant 0 : i32
    return %c0_i32, %c0_i32_0 : i32, i32
  }
  func.func @transform_5(%arg0: i32) -> (i32, i32) {
    %c0_i32 = arith.constant 0 : i32
    %c0_i32_0 = arith.constant 0 : i32
    return %arg0, %c0_i32 : i32, i32
  }
}

module attributes {stable_mosaic.version = 11 : i64} {
  func.func @_gate_residual_kernel(%arg0: i32, %arg1: memref<16x32xf32, #tpu.memory_space<vmem>>, %arg2: memref<16x32xf32, #tpu.memory_space<vmem>>, %arg3: memref<32x32xf32, #tpu.memory_space<vmem>>, %arg4: memref<32x32xf32, #tpu.memory_space<vmem>>, %arg5: memref<1x32xf32, #tpu.memory_space<vmem>>, %arg6: memref<16x32xf32, #tpu.memory_space<vmem>>) attributes {dimension_semantics = [#tpu.dimension_semantics<parallel>], iteration_bounds = array<i64: 1>, scalar_prefetch = 0 : i64, scratch_operands = 0 : i64, tpu.core_type = #tpu.core_type<tc>, window_params = [{transform_indices = @transform_0, window_bounds = array<i64: 16, 32>}, {transform_indices = @transform_1, window_bounds = array<i64: 16, 32>}, {pipeline_mode = #tpu.pipeline_mode<synchronous>, transform_indices = @transform_2, window_bounds = array<i64: 32, 32>}, {pipeline_mode = #tpu.pipeline_mode<synchronous>, transform_indices = @transform_3, window_bounds = array<i64: 32, 32>}, {pipeline_mode = #tpu.pipeline_mode<synchronous>, transform_indices = @transform_4, window_bounds = array<i64: 1, 32>}, {transform_indices = @transform_5, window_bounds = array<i64: 16, 32>}]} {
    %c0 = arith.constant 0 : index
    %c0_0 = arith.constant 0 : index
    %0 = vector.load %arg1[%c0, %c0_0] : memref<16x32xf32, #tpu.memory_space<vmem>>, vector<16x32xf32>
    %c0_1 = arith.constant 0 : index
    %c0_2 = arith.constant 0 : index
    %1 = vector.load %arg2[%c0_1, %c0_2] : memref<16x32xf32, #tpu.memory_space<vmem>>, vector<16x32xf32>
    %c0_3 = arith.constant 0 : index
    %c0_4 = arith.constant 0 : index
    %2 = vector.load %arg3[%c0_3, %c0_4] : memref<32x32xf32, #tpu.memory_space<vmem>>, vector<32x32xf32>
    %cst = arith.constant dense<0.000000e+00> : vector<16x32xf32>
    %3 = tpu.matmul %0, %2, %cst {dimension_numbers = #tpu.dot_dimension_numbers<[1], [0], [0], [1], [0, 0, 1, 1], [], []>} : vector<16x32xf32>, vector<32x32xf32>, vector<16x32xf32> -> vector<16x32xf32>
    %c0_5 = arith.constant 0 : index
    %c0_6 = arith.constant 0 : index
    %4 = vector.load %arg4[%c0_5, %c0_6] : memref<32x32xf32, #tpu.memory_space<vmem>>, vector<32x32xf32>
    %cst_7 = arith.constant dense<0.000000e+00> : vector<16x32xf32>
    %5 = tpu.matmul %1, %4, %cst_7 {dimension_numbers = #tpu.dot_dimension_numbers<[1], [0], [0], [1], [0, 0, 1, 1], [], []>} : vector<16x32xf32>, vector<32x32xf32>, vector<16x32xf32> -> vector<16x32xf32>
    %6 = arith.addf %3, %5 : vector<16x32xf32>
    %c0_8 = arith.constant 0 : index
    %c0_9 = arith.constant 0 : index
    %7 = vector.load %arg5[%c0_8, %c0_9] : memref<1x32xf32, #tpu.memory_space<vmem>>, vector<1x32xf32>
    %8 = vector.broadcast %7 : vector<1x32xf32> to vector<16x32xf32>
    %9 = arith.addf %6, %8 : vector<16x32xf32>
    %10 = arith.negf %9 : vector<16x32xf32>
    %11 = math.exp %10 : vector<16x32xf32>
    %cst_10 = arith.constant 1.000000e+00 : f32
    %12 = vector.broadcast %cst_10 : f32 to vector<16x32xf32>
    %13 = arith.addf %12, %11 : vector<16x32xf32>
    %14 = arith.divf %12, %13 : vector<16x32xf32>
    %15 = arith.subf %0, %1 : vector<16x32xf32>
    %16 = arith.mulf %14, %15 : vector<16x32xf32>
    %17 = arith.addf %1, %16 : vector<16x32xf32>
    %c0_11 = arith.constant 0 : index
    %c0_12 = arith.constant 0 : index
    %18 = vector.load %arg6[%c0_11, %c0_12] : memref<16x32xf32, #tpu.memory_space<vmem>>, vector<16x32xf32>
    tpu.vector_store %arg6[%c0_11, %c0_12], %17 {strides = array<i32>} : memref<16x32xf32, #tpu.memory_space<vmem>>, vector<16x32xf32>,
    return
  }
  func.func @transform_0(%arg0: i32) -> (i32, i32) {
    %c0_i32 = arith.constant 0 : i32
    %c0_i32_0 = arith.constant 0 : i32
    return %arg0, %c0_i32 : i32, i32
  }
  func.func @transform_1(%arg0: i32) -> (i32, i32) {
    %c0_i32 = arith.constant 0 : i32
    %c0_i32_0 = arith.constant 0 : i32
    return %arg0, %c0_i32 : i32, i32
  }
  func.func @transform_2(%arg0: i32) -> (i32, i32) {
    %c0_i32 = arith.constant 0 : i32
    %c0_i32_0 = arith.constant 0 : i32
    %c0_i32_1 = arith.constant 0 : i32
    return %c0_i32, %c0_i32_0 : i32, i32
  }
  func.func @transform_3(%arg0: i32) -> (i32, i32) {
    %c0_i32 = arith.constant 0 : i32
    %c0_i32_0 = arith.constant 0 : i32
    %c0_i32_1 = arith.constant 0 : i32
    return %c0_i32, %c0_i32_0 : i32, i32
  }
  func.func @transform_4(%arg0: i32) -> (i32, i32) {
    %c0_i32 = arith.constant 0 : i32
    %c0_i32_0 = arith.constant 0 : i32
    %c0_i32_1 = arith.constant 0 : i32
    return %c0_i32, %c0_i32_0 : i32, i32
  }
  func.func @transform_5(%arg0: i32) -> (i32, i32) {
    %c0_i32 = arith.constant 0 : i32
    %c0_i32_0 = arith.constant 0 : i32
    return %arg0, %c0_i32 : i32, i32
  }
}

</mosaic_0001>

<bundles_post_ra>
// kernel: tpu_custom_call.1
= control target key start
LH: loop header
LB: loop body
LE: loop exit
PB: predicated region body
PF: predicated region fallthrough
CT: control target
= control target key end

     0   :  { %10 = vsyncpa [#allocation3], 0  ;;  %s539_s0 = inlined_call_operand.hbm [shape: f32[16,32], index: 0, kind: input, shape index: {}]   ;;  %s540_s1 = inlined_call_operand.hbm [shape: f32[16,32], index: 1, kind: input, shape index: {}]   ;;  %s541_s2 = inlined_call_operand.hbm [shape: f32[32,32], index: 2, kind: input, shape index: {}]   ;;  %s542_s3 = inlined_call_operand.hbm [shape: f32[32,32], index: 3, kind: input, shape index: {}]   ;;  %s543_s4 = inlined_call_operand.vmem [shape: f32[1,32], index: 4, kind: input, shape index: {}]   ;;  %s544_s5 = inlined_call_operand.hbm [shape: f32[16,32], index: 5, kind: output, shape index: {}]  }
   0x1   :  { %11 = vsyncpa [#allocation6], 0 }
   0x2   :  { %12 = vsyncpa [#allocation9], 0 }
   0x3   :  { %13 = vsyncpa [#allocation4], 0  ;;  %s463_s18 = smov [#allocation5]   ;;  %s464_s20 = smov [#allocation2]  }
   0x4   :  { %s31_s19 = sshll.u32 %s463_s18, 4  ;;  %s19_s21 = sshll.u32 %s464_s20, 4  ;;  %s32_s19 = int_to_ptr.vmem [resolvable:$true] %s31_s19  ;;  %s20_s21 = int_to_ptr.vmem [resolvable:$true] %s19_s21 }
   0x5   :  { %s363_s22 = scalar_lea.vmem %s32_s19, 256  ;;  %p368_p1 = scmp.lt.s32.totalorder %s32_s19, %s32_s19 }
   0x6   :  { %p364_p0 = scmp.ne.s32.totalorder %s32_s19, %s363_s22  ;;  %p369_p2 = scmp.lt.s32.totalorder %s363_s22, %s363_s22 }
   0x8   :  { %p370_p3 = por %p369_p2, %p368_p1 }
   0xa   :  { %p371_p4 = pnand %p370_p3, %p364_p0 }
   0xc   :  { %374 = shalt.err (!%p371_p4)
}
   0xd   :  { %s465_s23 = smov 128   ;;  %s466_s24 = smov 8  }
   0xe   :  { %37 = dma.hbm_to_vmem [thread:$0]  %s540_s1, 256, %s32_s19, [#allocation6], %s465_s23, %s465_s23, %s466_s24  }
   0xf   :  { %s383_s27 = scalar_lea.vmem %s20_s21, 256  ;;  %p388_p6 = scmp.lt.s32.totalorder %s20_s21, %s20_s21 }
  0x10   :  { %p384_p5 = scmp.ne.s32.totalorder %s20_s21, %s383_s27  ;;  %p389_p7 = scmp.lt.s32.totalorder %s383_s27, %s383_s27 }
  0x12   :  { %p390_p8 = por %p389_p7, %p388_p6 }
  0x14   :  { %p391_p9 = pnand %p390_p8, %p384_p5 }
  0x16   :  { %394 = shalt.err (!%p391_p9)
}
  0x17   :  { %25 = dma.hbm_to_vmem [thread:$0]  %s539_s0, 256, %s20_s21, [#allocation3], %s465_s23, %s465_s23, %s466_s24  }
  0x18   :  { %s467_s30 = smov [#allocation7]   ;;  %s468_s7 = smov [#allocation8]  }
  0x19   :  { %s43_s6 = sshll.u32 %s467_s30, 4  ;;  %s55_s8 = sshll.u32 %s468_s7, 4  ;;  %s44_s6 = int_to_ptr.vmem [resolvable:$true] %s43_s6  ;;  %s56_s8 = int_to_ptr.vmem [resolvable:$true] %s55_s8 }
  0x1a   :  { %s403_s1 = scalar_lea.vmem %s44_s6, 512  ;;  %p408_p11 = scmp.lt.s32.totalorder %s44_s6, %s44_s6 }
  0x1b   :  { %p404_p10 = scmp.ne.s32.totalorder %s44_s6, %s403_s1  ;;  %p409_p12 = scmp.lt.s32.totalorder %s403_s1, %s403_s1 }
  0x1d   :  { %p410_p13 = por %p409_p12, %p408_p11 }
  0x1f   :  { %p411_p0 = pnand %p410_p13, %p404_p10 }
  0x21   :  { %414 = shalt.err (!%p411_p0)
}
  0x22   :  { %49 = dma.hbm_to_vmem [thread:$0]  %s541_s2, 512, %s44_s6, [#allocation6], %s465_s23, %s465_s23, %s466_s24  }
  0x23   :  { %s423_s0 = scalar_lea.vmem %s56_s8, 512  ;;  %p428_p2 = scmp.lt.s32.totalorder %s56_s8, %s56_s8 }
  0x24   :  { %p424_p1 = scmp.ne.s32.totalorder %s56_s8, %s423_s0  ;;  %p429_p3 = scmp.lt.s32.totalorder %s423_s0, %s423_s0 }
  0x26   :  { %p430_p4 = por %p429_p3, %p428_p2 }
  0x28   :  { %p431_p5 = pnand %p430_p4, %p424_p1 }
  0x2a   :  { %434 = shalt.err (!%p431_p5)
}
  0x2b   :  { %61 = dma.hbm_to_vmem [thread:$0]  %s542_s3, 512, %s56_s8, [#allocation9], %s465_s23, %s465_s23, %s466_s24  }
  0x2c   :  { %455 = dma.done.wait [#allocation3], 256  }
  0x2d   :  { %456 = vsyncadd [#allocation3], 4294967040 }
  0x2e   :  { %457 = dma.done.wait [#allocation6], 768  }
  0x2f   :  { %458 = vsyncadd [#allocation6], 4294966528 }
  0x30   :  { %459 = dma.done.wait [#allocation9], 512  }
  0x31   :  { %460 = vsyncadd [#allocation9], 4294966784  ;;  %v87_v0 = vld [vmem:[#allocation8 + $0x18] sm:$0xff]  ;;  %v86_v2 = vld [vmem:[#allocation8 + $0x10] sm:$0xff]  ;;  %vm88_vm0 = vcmask 261120  }
  0x32   :  { %v83_v1 = vld [vmem:[#allocation7 + $0x18] sm:$0xff]  ;;  %318 = vmatprep.subr.mxu0 %v87_v0  ;;  %v82_v3 = vld [vmem:[#allocation7 + $0x10] sm:$0xff]  ;;  %v85_v4 = vld [vmem:[#allocation8 + $0x8] sm:$0xff] }
  0x33   :  { %329 = vmatprep.subr.mxu1 %v83_v1  ;;  %319 = vmatpush3.msra.mxu0 %v87_v0  ;;  %v81_v5 = vld [vmem:[#allocation7 + $0x8] sm:$0xff]  ;;  %v84_v6 = vld [vmem:[#allocation8] sm:$0xff]  ;;  %v78_v8 = vld [vmem:[#allocation5] sm:$0xff] }
  0x34   :  { %330 = vmatpush3.msra.mxu1 %v83_v1  ;;  %320 = vmatprep.subr.mxu0 %v86_v2  ;;  %v80_v7 = vld [vmem:[#allocation7] sm:$0xff]  ;;  %v79_v10 = vld [vmem:[#allocation5 + $0x8] sm:$0xff]  ;;  %v77_v11 = vld [vmem:[#allocation2 + $0x8] sm:$0xff] }
  0x35   :  { %331 = vmatprep.subr.mxu1 %v82_v3  ;;  %321 = vmatpush3.msra.mxu0 %v86_v2  ;;  %v76_v9 = vld [vmem:[#allocation2] sm:$0xff]  ;;  %v273_v27 = vsub.f32 %v77_v11, %v79_v10 }
  0x36   :  { %332 = vmatpush3.msra.mxu1 %v82_v3  ;;  %322 = vmatprep.subr.mxu0 %v85_v4  ;;  %v303_v14 = vld [vmem:[%s543_s4] ss:$0 sm:$0xff]  ;;  %v272_v28 = vsub.f32 %v76_v9, %v78_v8  ;;  %s469_s4 = smov [#allocation10]  }
  0x37   :  { %333 = vmatprep.subr.mxu1 %v81_v5  ;;  %323 = vmatpush3.msra.mxu0 %v85_v4  ;;  %s285_s13 = sshll.u32 %s469_s4, 4  ;;  %s286_s13 = int_to_ptr.vmem [resolvable:$true] %s285_s13 }
  0x38   :  { %334 = vmatpush3.msra.mxu1 %v81_v5  ;;  %324 = vmatprep.subr.mxu0 %v84_v6  ;;  %s435_s14 = scalar_lea.vmem %s286_s13, 256  ;;  %p440_p7 = scmp.lt.s32.totalorder %s286_s13, %s286_s13 }
  0x39   :  { %335 = vmatprep.subr.mxu1 %v80_v7  ;;  %325 = vmatpush3.msra.mxu0 %v84_v6  ;;  %p436_p6 = scmp.ne.s32.totalorder %s286_s13, %s435_s14  ;;  %p441_p8 = scmp.lt.s32.totalorder %s435_s14, %s435_s14 }
  0x3a   :  { %326 = vmatprep.mubr.msk.f32.mxu0 %vm88_vm0, %v78_v8  ;;  %336 = vmatpush3.msra.mxu1 %v80_v7 }
  0x3b   :  { %337 = vmatprep.mubr.msk.f32.mxu1 %vm88_vm0, %v76_v9  ;;  %327 = vmatmul.mubr.msk.f32.vlgmr.msra.gmra.mxu0 %vm88_vm0, %v79_v10  ;;  %p442_p9 = por %p441_p8, %p440_p7 }
  0x3c   :  { %338 = vmatmul.mubr.msk.f32.vlgmr.msra.gmra.mxu1 %vm88_vm0, %v77_v11 }
  0x3d   :  { %p443_p10 = pnand %p442_p9, %p436_p6 }
  0xfb   :  { %v328_v12 = vpop.f32.mrf.mxu0 }
  0xfc   :  { %v339_v13 = vpop.f32.mrf.mxu1 }
  0xfd   :  { %v248_v15 = vadd.f32 %v339_v13, %v328_v12  ;;  %v161_v16 = vpop.f32.mrf.mxu0 }
  0xfe   :  { %v242_v17 = vpop.f32.mrf.mxu1 }
  0xff   :  { %v259_v18 = vadd.f32 %v303_v14, %v248_v15  ;;  %v243_v19 = vadd.f32 %v242_v17, %v161_v16 }
 0x101   :  { %v305_v20 = vmul.f32 -1.442695, %v259_v18  ;;  %v258_v21 = vadd.f32 %v303_v14, %v243_v19 }
 0x103   :  { %347 = vpow2.f32 %v305_v20  ;;  %v304_v22 = vmul.f32 -1.442695, %v258_v21 }
 0x105   :  { %349 = vpow2.f32 %v304_v22 }
 0x110   :  { %v348_v23 = vpop.eup %347 }
 0x111   :  { %v267_v24 = vadd.f32 1.0, %v348_v23 }
 0x112   :  { %v350_v25 = vpop.eup %349 }
 0x113   :  { %351 = vrcp.f32 %v267_v24  ;;  %v266_v26 = vadd.f32 1.0, %v350_v25 }
 0x115   :  { %353 = vrcp.f32 %v266_v26 }
 0x120   :  { %v352_v29 = vpop.eup %351 }
 0x121   :  { %v275_v30 = vmul.f32 %v352_v29, %v273_v27 }
 0x122   :  { %v354_v31 = vpop.eup %353 }
 0x123   :  { %v274_v32 = vmul.f32 %v354_v31, %v272_v28  ;;  %v277_v33 = vadd.f32 %v275_v30, %v79_v10 }
 0x125   :  { %v276_v34 = vadd.f32 %v274_v32, %v78_v8  ;;  %279 = vst.msk [vmem:[#allocation10 + $0x8] sm:$0xff] %vm88_vm0, %v277_v33 }
 0x127   :  { %278 = vst.msk [vmem:[#allocation10] sm:$0xff] %vm88_vm0, %v276_v34 }
 0x128   :  { %446 = shalt.err (!%p443_p10)
}
 0x129   :  { %291 = dma.vmem_to_hbm [thread:$0]  %s286_s13, 256, %s544_s5, [#allocation4], %s465_s23, %s465_s23, %s466_s24  }
 0x12a   :  { %461 = dma.done.wait [#allocation4], 256  }
 0x12b   :  { %462 = vsyncadd [#allocation4], 4294967040 }
 0x12c   :  { %295 = vsyncpa [#allocation3], 1 }
 0x12d   :  { %296 = vsyncpa [#allocation6], 1 }
 0x12e   :  { %297 = vsyncpa [#allocation9], 1 }
 0x12f   :  { %298 = vsyncpa [#allocation4], 1 }

// kernel: tpu_custom_call.1
= control target key start
LH: loop header
LB: loop body
LE: loop exit
PB: predicated region body
PF: predicated region fallthrough
CT: control target
= control target key end

     0   :  { %10 = vsyncpa [#allocation3], 0  ;;  %s539_s0 = inlined_call_operand.hbm [shape: f32[16,32], index: 0, kind: input, shape index: {}]   ;;  %s540_s1 = inlined_call_operand.hbm [shape: f32[16,32], index: 1, kind: input, shape index: {}]   ;;  %s541_s2 = inlined_call_operand.hbm [shape: f32[32,32], index: 2, kind: input, shape index: {}]   ;;  %s542_s3 = inlined_call_operand.hbm [shape: f32[32,32], index: 3, kind: input, shape index: {}]   ;;  %s543_s4 = inlined_call_operand.vmem [shape: f32[1,32], index: 4, kind: input, shape index: {}]   ;;  %s544_s5 = inlined_call_operand.hbm [shape: f32[16,32], index: 5, kind: output, shape index: {}]  }
   0x1   :  { %11 = vsyncpa [#allocation6], 0 }
   0x2   :  { %12 = vsyncpa [#allocation9], 0 }
   0x3   :  { %13 = vsyncpa [#allocation4], 0  ;;  %s463_s18 = smov [#allocation5]   ;;  %s464_s20 = smov [#allocation2]  }
   0x4   :  { %s31_s19 = sshll.u32 %s463_s18, 4  ;;  %s19_s21 = sshll.u32 %s464_s20, 4  ;;  %s32_s19 = int_to_ptr.vmem [resolvable:$true] %s31_s19  ;;  %s20_s21 = int_to_ptr.vmem [resolvable:$true] %s19_s21 }
   0x5   :  { %s363_s22 = scalar_lea.vmem %s32_s19, 256  ;;  %p368_p1 = scmp.lt.s32.totalorder %s32_s19, %s32_s19 }
   0x6   :  { %p364_p0 = scmp.ne.s32.totalorder %s32_s19, %s363_s22  ;;  %p369_p2 = scmp.lt.s32.totalorder %s363_s22, %s363_s22 }
   0x8   :  { %p370_p3 = por %p369_p2, %p368_p1 }
   0xa   :  { %p371_p4 = pnand %p370_p3, %p364_p0 }
   0xc   :  { %374 = shalt.err (!%p371_p4)
}
   0xd   :  { %s465_s23 = smov 128   ;;  %s466_s24 = smov 8  }
   0xe   :  { %37 = dma.hbm_to_vmem [thread:$0]  %s540_s1, 256, %s32_s19, [#allocation6], %s465_s23, %s465_s23, %s466_s24  }
   0xf   :  { %s383_s27 = scalar_lea.vmem %s20_s21, 256  ;;  %p388_p6 = scmp.lt.s32.totalorder %s20_s21, %s20_s21 }
  0x10   :  { %p384_p5 = scmp.ne.s32.totalorder %s20_s21, %s383_s27  ;;  %p389_p7 = scmp.lt.s32.totalorder %s383_s27, %s383_s27 }
  0x12   :  { %p390_p8 = por %p389_p7, %p388_p6 }
  0x14   :  { %p391_p9 = pnand %p390_p8, %p384_p5 }
  0x16   :  { %394 = shalt.err (!%p391_p9)
}
  0x17   :  { %25 = dma.hbm_to_vmem [thread:$0]  %s539_s0, 256, %s20_s21, [#allocation3], %s465_s23, %s465_s23, %s466_s24  }
  0x18   :  { %s467_s30 = smov [#allocation7]   ;;  %s468_s7 = smov [#allocation8]  }
  0x19   :  { %s43_s6 = sshll.u32 %s467_s30, 4  ;;  %s55_s8 = sshll.u32 %s468_s7, 4  ;;  %s44_s6 = int_to_ptr.vmem [resolvable:$true] %s43_s6  ;;  %s56_s8 = int_to_ptr.vmem [resolvable:$true] %s55_s8 }
  0x1a   :  { %s403_s1 = scalar_lea.vmem %s44_s6, 512  ;;  %p408_p11 = scmp.lt.s32.totalorder %s44_s6, %s44_s6 }
  0x1b   :  { %p404_p10 = scmp.ne.s32.totalorder %s44_s6, %s403_s1  ;;  %p409_p12 = scmp.lt.s32.totalorder %s403_s1, %s403_s1 }
  0x1d   :  { %p410_p13 = por %p409_p12, %p408_p11 }
  0x1f   :  { %p411_p0 = pnand %p410_p13, %p404_p10 }
  0x21   :  { %414 = shalt.err (!%p411_p0)
}
  0x22   :  { %49 = dma.hbm_to_vmem [thread:$0]  %s541_s2, 512, %s44_s6, [#allocation6], %s465_s23, %s465_s23, %s466_s24  }
  0x23   :  { %s423_s0 = scalar_lea.vmem %s56_s8, 512  ;;  %p428_p2 = scmp.lt.s32.totalorder %s56_s8, %s56_s8 }
  0x24   :  { %p424_p1 = scmp.ne.s32.totalorder %s56_s8, %s423_s0  ;;  %p429_p3 = scmp.lt.s32.totalorder %s423_s0, %s423_s0 }
  0x26   :  { %p430_p4 = por %p429_p3, %p428_p2 }
  0x28   :  { %p431_p5 = pnand %p430_p4, %p424_p1 }
  0x2a   :  { %434 = shalt.err (!%p431_p5)
}
  0x2b   :  { %61 = dma.hbm_to_vmem [thread:$0]  %s542_s3, 512, %s56_s8, [#allocation9], %s465_s23, %s465_s23, %s466_s24  }
  0x2c   :  { %455 = dma.done.wait [#allocation3], 256  }
  0x2d   :  { %456 = vsyncadd [#allocation3], 4294967040 }
  0x2e   :  { %457 = dma.done.wait [#allocation6], 768  }
  0x2f   :  { %458 = vsyncadd [#allocation6], 4294966528 }
  0x30   :  { %459 = dma.done.wait [#allocation9], 512  }
  0x31   :  { %460 = vsyncadd [#allocation9], 4294966784  ;;  %v87_v0 = vld [vmem:[#allocation8 + $0x18] sm:$0xff]  ;;  %v86_v2 = vld [vmem:[#allocation8 + $0x10] sm:$0xff]  ;;  %vm88_vm0 = vcmask 261120  }
  0x32   :  { %v83_v1 = vld [vmem:[#allocation7 + $0x18] sm:$0xff]  ;;  %318 = vmatprep.subr.mxu0 %v87_v0  ;;  %v82_v3 = vld [vmem:[#allocation7 + $0x10] sm:$0xff]  ;;  %v85_v4 = vld [vmem:[#allocation8 + $0x8] sm:$0xff] }
  0x33   :  { %329 = vmatprep.subr.mxu1 %v83_v1  ;;  %319 = vmatpush3.msra.mxu0 %v87_v0  ;;  %v81_v5 = vld [vmem:[#allocation7 + $0x8] sm:$0xff]  ;;  %v84_v6 = vld [vmem:[#allocation8] sm:$0xff]  ;;  %v78_v8 = vld [vmem:[#allocation5] sm:$0xff] }
  0x34   :  { %330 = vmatpush3.msra.mxu1 %v83_v1  ;;  %320 = vmatprep.subr.mxu0 %v86_v2  ;;  %v80_v7 = vld [vmem:[#allocation7] sm:$0xff]  ;;  %v79_v10 = vld [vmem:[#allocation5 + $0x8] sm:$0xff]  ;;  %v77_v11 = vld [vmem:[#allocation2 + $0x8] sm:$0xff] }
  0x35   :  { %331 = vmatprep.subr.mxu1 %v82_v3  ;;  %321 = vmatpush3.msra.mxu0 %v86_v2  ;;  %v76_v9 = vld [vmem:[#allocation2] sm:$0xff]  ;;  %v273_v27 = vsub.f32 %v77_v11, %v79_v10 }
  0x36   :  { %332 = vmatpush3.msra.mxu1 %v82_v3  ;;  %322 = vmatprep.subr.mxu0 %v85_v4  ;;  %v303_v14 = vld [vmem:[%s543_s4] ss:$0 sm:$0xff]  ;;  %v272_v28 = vsub.f32 %v76_v9, %v78_v8  ;;  %s469_s4 = smov [#allocation10]  }
  0x37   :  { %333 = vmatprep.subr.mxu1 %v81_v5  ;;  %323 = vmatpush3.msra.mxu0 %v85_v4  ;;  %s285_s13 = sshll.u32 %s469_s4, 4  ;;  %s286_s13 = int_to_ptr.vmem [resolvable:$true] %s285_s13 }
  0x38   :  { %334 = vmatpush3.msra.mxu1 %v81_v5  ;;  %324 = vmatprep.subr.mxu0 %v84_v6  ;;  %s435_s14 = scalar_lea.vmem %s286_s13, 256  ;;  %p440_p7 = scmp.lt.s32.totalorder %s286_s13, %s286_s13 }
  0x39   :  { %335 = vmatprep.subr.mxu1 %v80_v7  ;;  %325 = vmatpush3.msra.mxu0 %v84_v6  ;;  %p436_p6 = scmp.ne.s32.totalorder %s286_s13, %s435_s14  ;;  %p441_p8 = scmp.lt.s32.totalorder %s435_s14, %s435_s14 }
  0x3a   :  { %326 = vmatprep.mubr.msk.f32.mxu0 %vm88_vm0, %v78_v8  ;;  %336 = vmatpush3.msra.mxu1 %v80_v7 }
  0x3b   :  { %337 = vmatprep.mubr.msk.f32.mxu1 %vm88_vm0, %v76_v9  ;;  %327 = vmatmul.mubr.msk.f32.vlgmr.msra.gmra.mxu0 %vm88_vm0, %v79_v10  ;;  %p442_p9 = por %p441_p8, %p440_p7 }
  0x3c   :  { %338 = vmatmul.mubr.msk.f32.vlgmr.msra.gmra.mxu1 %vm88_vm0, %v77_v11 }
  0x3d   :  { %p443_p10 = pnand %p442_p9, %p436_p6 }
  0xfb   :  { %v328_v12 = vpop.f32.mrf.mxu0 }
  0xfc   :  { %v339_v13 = vpop.f32.mrf.mxu1 }
  0xfd   :  { %v248_v15 = vadd.f32 %v339_v13, %v328_v12  ;;  %v161_v16 = vpop.f32.mrf.mxu0 }
  0xfe   :  { %v242_v17 = vpop.f32.mrf.mxu1 }
  0xff   :  { %v259_v18 = vadd.f32 %v303_v14, %v248_v15  ;;  %v243_v19 = vadd.f32 %v242_v17, %v161_v16 }
 0x101   :  { %v305_v20 = vmul.f32 -1.442695, %v259_v18  ;;  %v258_v21 = vadd.f32 %v303_v14, %v243_v19 }
 0x103   :  { %347 = vpow2.f32 %v305_v20  ;;  %v304_v22 = vmul.f32 -1.442695, %v258_v21 }
 0x105   :  { %349 = vpow2.f32 %v304_v22 }
 0x110   :  { %v348_v23 = vpop.eup %347 }
 0x111   :  { %v267_v24 = vadd.f32 1.0, %v348_v23 }
 0x112   :  { %v350_v25 = vpop.eup %349 }
 0x113   :  { %351 = vrcp.f32 %v267_v24  ;;  %v266_v26 = vadd.f32 1.0, %v350_v25 }
 0x115   :  { %353 = vrcp.f32 %v266_v26 }
 0x120   :  { %v352_v29 = vpop.eup %351 }
 0x121   :  { %v275_v30 = vmul.f32 %v352_v29, %v273_v27 }
 0x122   :  { %v354_v31 = vpop.eup %353 }
 0x123   :  { %v274_v32 = vmul.f32 %v354_v31, %v272_v28  ;;  %v277_v33 = vadd.f32 %v275_v30, %v79_v10 }
 0x125   :  { %v276_v34 = vadd.f32 %v274_v32, %v78_v8  ;;  %279 = vst.msk [vmem:[#allocation10 + $0x8] sm:$0xff] %vm88_vm0, %v277_v33 }
 0x127   :  { %278 = vst.msk [vmem:[#allocation10] sm:$0xff] %vm88_vm0, %v276_v34 }
 0x128   :  { %446 = shalt.err (!%p443_p10)
}
 0x129   :  { %291 = dma.vmem_to_hbm [thread:$0]  %s286_s13, 256, %s544_s5, [#allocation4], %s465_s23, %s465_s23, %s466_s24  }
 0x12a   :  { %461 = dma.done.wait [#allocation4], 256  }
 0x12b   :  { %462 = vsyncadd [#allocation4], 4294967040 }
 0x12c   :  { %295 = vsyncpa [#allocation3], 1 }
 0x12d   :  { %296 = vsyncpa [#allocation6], 1 }
 0x12e   :  { %297 = vsyncpa [#allocation9], 1 }
 0x12f   :  { %298 = vsyncpa [#allocation4], 1 }

</bundles_post_ra>
